<compile_context>
chip_gen: v6e
topology: v6e:2x2x1
jax: 0.10.0
libtpu: 0.0.40
codegen_flags: <defaults>
</compile_context>

<pallas_src>
import math

import jax
import jax.numpy as jnp
from jax.experimental import pallas as pl
from jax.experimental.pallas import tpu as pltpu


# --------------------------------------------------------------------------- #
# Hardware queries (best-effort, with safe fallbacks)
# --------------------------------------------------------------------------- #
def _vmem_capacity_bytes():
    try:
        info = pltpu.get_tpu_info()
        cap = getattr(info, "vmem_capacity_bytes", None)
        if cap:
            return int(cap)
    except Exception:
        pass
    return 64 * 1024 * 1024  # conservative (v7x per-TC)


def _num_tensorcores():
    # 2 TensorCores per device on v4/v5p (megacore) and v7x; 1 on v5e/v6e.
    try:
        kind = jax.devices()[0].device_kind.lower()
    except Exception:
        return 1
    return 2 if any(t in kind for t in ("v7", "v4", "v5p")) else 1


def _round_up(v, m):
    return ((v + m - 1) // m) * m


# --------------------------------------------------------------------------- #
# Plain-jnp path (tiny inputs / degenerate shapes)
# --------------------------------------------------------------------------- #
def _jnp_loss(x_hat, x):
    B = x.shape[0]
    xh = x_hat.reshape(B, -1).astype(jnp.float32)
    xf = x.reshape(B, -1).astype(jnp.float32)
    eps = jnp.float32(1e-8)
    dot = jnp.sum(xh * xf, axis=1)
    nh = jnp.sqrt(jnp.sum(xh * xh, axis=1))
    nx = jnp.sqrt(jnp.sum(xf * xf, axis=1))
    cos = dot / (jnp.maximum(nh, eps) * jnp.maximum(nx, eps))
    return jnp.mean(1.0 - cos)


# --------------------------------------------------------------------------- #
# Pallas kernel
# --------------------------------------------------------------------------- #
def _make_partials_kernel(rows, td, L, K_per, needs_mask):
    """Kernel producing fused per-row partials: dot, ||x_hat||^2, ||x||^2.

    Grid = (P, K_per). The single output block (1, 3, rows, 128) keeps a
    constant block index along the "arbitrary" K axis, so it stays resident in
    VMEM and acts as a lane-dense accumulator (init at k == 0).
    """
    G = td // 128  # 128-lane groups per tile

    def kernel(xh_ref, x_ref, out_ref):
        p = pl.program_id(0)
        k = pl.program_id(1)

        @pl.when(k == 0)
        def _init():
            out_ref[...] = jnp.zeros_like(out_ref)

        if needs_mask:
            # Global block index -> number of valid lanes in this tile.
            g = p * K_per + k
            valid = L - g * td  # >= 1 by construction; >= td for full tiles
            lane = jax.lax.broadcasted_iota(jnp.int32, (rows, 128), 1)

        def body(grp, carry):
            d, nh, nx = carry
            off = pl.multiple_of(grp * 128, 128)
            xh = xh_ref[:, pl.ds(off, 128)]
            xx = x_ref[:, pl.ds(off, 128)]
            if needs_mask:
                # Mask BEFORE multiplying so garbage in the out-of-range part
                # of the block (Pallas does not zero it) never propagates.
                m = (lane + off) < valid
                xh = jnp.where(m, xh, jnp.zeros_like(xh))
                xx = jnp.where(m, xx, jnp.zeros_like(xx))
            xh = xh.astype(jnp.float32)
            xx = xx.astype(jnp.float32)
            return (d + xh * xx, nh + xh * xh, nx + xx * xx)

        zero = jnp.zeros((rows, 128), jnp.float32)
        d, nh, nx = jax.lax.fori_loop(0, G, body, (zero, zero, zero),
                                      unroll=min(8, G))

        # Lane-dense, unmasked read-modify-write accumulation.
        out_ref[0, 0, :, :] += d
        out_ref[0, 1, :, :] += nh
        out_ref[0, 2, :, :] += nx

    return kernel


def cosine_similarity_loss(x_hat, x, *, target_block_bytes=None, use_pallas=None):
    """Pallas implementation of CosineSimilarityLoss.forward(x_hat, x)."""
    assert x_hat.shape == x.shape, "x_hat and x must have the same shape"
    B = x.shape[0]
    D = math.prod(x.shape[1:]) if len(x.shape) > 1 else 1
    itemsize = max(jnp.dtype(x.dtype).itemsize, jnp.dtype(x_hat.dtype).itemsize)
    total_bytes = B * D * itemsize

    # ---- small-input fast path ----------------------------------------------
    if use_pallas is None:
        use_pallas = total_bytes > (1 << 20)
    if (not use_pallas) or D < 128:
        return _jnp_loss(x_hat, x)

    # ---- layout decisions ----------------------------------------------------
    # Sub-row packing: split each sample into R contiguous sub-rows so the row
    # count fills the packed sublane tile (8 f32 / 16 bf16 / 32 int8 rows),
    # but only when R divides D exactly (no padding allowed).
    sub = max(8, 32 // int(itemsize))
    r_needed = sub // math.gcd(B, sub)
    if r_needed > 1 and D % r_needed == 0 and (D // r_needed) >= 128:
        R = r_needed
    else:
        R = 1
    rows = B * R
    L = D // R  # per-(sub-)row length; NOT padded

    # VMEM-sized, lane-dense tile width (multiple of 128).
    vmem_cap = _vmem_capacity_bytes()
    if target_block_bytes is None:
        target_block_bytes = (8 << 20) if vmem_cap > (96 << 20) else (2 << 20)
    row_bytes = rows * itemsize
    td_max = max(128, (target_block_bytes // row_bytes) // 128 * 128)
    td_max = min(td_max, _round_up(L, 128))

    # Parallel (2-TC) split only where it exists; never create fully-OOB blocks.
    num_tc = _num_tensorcores()
    P = 1
    td = min(td_max, _round_up(L, 128))
    K_per = -(-L // td)
    if num_tc > 1:
        k_per2 = max(1, -(-L // (num_tc * td_max)))
        k_tot2 = num_tc * k_per2
        td2 = _round_up(-(-L // k_tot2), 128)
        if (k_tot2 - 1) * td2 < L:  # last block overlaps real data
            P, K_per, td = num_tc, k_per2, td2
    K_total = P * K_per
    needs_mask = (K_total * td != L)

    # VMEM cap from the actual working set: 2 inputs x 2 pipeline buffers x tile
    # (+ tiny f32 output block + headroom), clamped to physical VMEM.
    working = 4 * rows * td * itemsize
    vmem_limit = max(32 << 20, min(int(working * 1.5) + (8 << 20), vmem_cap))

    # ---- glue: reshape only (no HBM pad copy) --------------------------------
    xh2 = x_hat.reshape(rows, L)  # row b*R + r holds sub-row r of sample b
    x2 = x.reshape(rows, L)

    in_spec = pl.BlockSpec((rows, td), lambda p, k: (0, p * K_per + k))
    out_spec = pl.BlockSpec((1, 3, rows, 128), lambda p, k: (p, 0, 0, 0))

    parts = pl.pallas_call(
        _make_partials_kernel(rows, td, L, K_per, needs_mask),
        out_shape=jax.ShapeDtypeStruct((P, 3, rows, 128), jnp.float32),
        grid_spec=pltpu.PrefetchScalarGridSpec(
            num_scalar_prefetch=0,
            grid=(P, K_per),
            in_specs=[in_spec, in_spec],
            out_specs=out_spec,
        ),
        compiler_params=pltpu.CompilerParams(
            # TODO(synk): on v7x, verify the leading axis is actually sharded
            # across the 2 TensorCores (CORE_PARALLEL) once that path is safe
            # to request unconditionally.
            dimension_semantics=("parallel", "arbitrary"),
            vmem_limit_bytes=int(vmem_limit),
        ),
    )(xh2, x2)

    # ---- tiny O(B) final combine in JAX --------------------------------------
    sums = parts.sum(axis=(0, 3))              # (3, rows): reduce P and 128 lanes
    sums = sums.reshape(3, B, R).sum(axis=-1)  # (3, B): recombine sub-rows
    dot, nxh, nx = sums[0], sums[1], sums[2]

    # Like PyTorch: each norm is clamped at eps before the product.
    eps = jnp.float32(1e-8)
    cos = dot / (jnp.maximum(jnp.sqrt(nxh), eps) * jnp.maximum(jnp.sqrt(nx), eps))
    return jnp.mean(1.0 - cos)


# --------------------------------------------------------------------------- #
# Reference + tests
# --------------------------------------------------------------------------- #
def _reference(x_hat, x):
    B = x.shape[0]
    xh = x_hat.reshape(B, -1).astype(jnp.float32)
    xf = x.reshape(B, -1).astype(jnp.float32)
    eps = 1e-8
    dot = jnp.sum(xh * xf, axis=1)
    cos = dot / (
        jnp.maximum(jnp.linalg.norm(xh, axis=1), eps)
        * jnp.maximum(jnp.linalg.norm(xf, axis=1), eps)
    )
    return jnp.mean(1.0 - cos)


if __name__ == "__main__":
    key = jax.random.PRNGKey(0)
    k1, k2, k3, k4 = jax.random.split(key, 4)

    # Primary case: small NCHW inputs consistent with an MAE reconstruction loss.
    B, C, H, W = 2, 4, 16, 16
    x = jax.random.normal(k1, (B, C, H, W), dtype=jnp.float32)
    x_hat = x + 0.1 * jax.random.normal(k2, (B, C, H, W), dtype=jnp.float32)

    loss = jax.block_until_ready(cosine_similarity_loss(x_hat, x, use_pallas=True))
    ref = _reference(x_hat, x)
    assert jnp.allclose(loss, ref, rtol=1e-5, atol=1e-6), (loss, ref)

    # Multi-step reduction + ragged-tail masking (and the 2-TC split on v7x/v4/v5p),
    # forced by a tiny tile budget.
    x2 = jax.random.normal(k3, (2, 4, 28, 28), dtype=jnp.float32)
    xh2 = x2 + 0.05 * jax.random.normal(k4, (2, 4, 28, 28), dtype=jnp.float32)
    loss2 = jax.block_until_ready(
        cosine_similarity_loss(xh2, x2, target_block_bytes=8 * 1024, use_pallas=True)
    )
    ref2 = _reference(xh2, x2)
    assert jnp.allclose(loss2, ref2, rtol=1e-5, atol=1e-6), (loss2, ref2)

    # bf16 stays bf16 on the wire (16-row sublane packing, ragged tail masked),
    # accumulation is f32.
    loss3 = jax.block_until_ready(
        cosine_similarity_loss(
            xh2.astype(jnp.bfloat16), x2.astype(jnp.bfloat16), use_pallas=True
        )
    )
    ref3 = _reference(xh2.astype(jnp.bfloat16), x2.astype(jnp.bfloat16))
    assert jnp.allclose(loss3, ref3, rtol=1e-3, atol=1e-4), (loss3, ref3)

    # Auto mode: tiny inputs take the plain-jnp fast path (no kernel overhead).
    loss4 = jax.block_until_ready(cosine_similarity_loss(x_hat, x))
    assert jnp.allclose(loss4, ref, rtol=1e-5, atol=1e-6), (loss4, ref)

    print("KERNEL_OK")
</pallas_src>

<mosaic_0001>
module attributes {stable_mosaic.version = 11 : i64} {
  func.func @kernel(%arg0: i32, %arg1: i32, %arg2: memref<8x256xf32, #tpu.memory_space<vmem>>, %arg3: memref<8x256xf32, #tpu.memory_space<vmem>>, %arg4: memref<1x3x8x128xf32, #tpu.memory_space<vmem>>) attributes {dimension_semantics = [#tpu.dimension_semantics<parallel>, #tpu.dimension_semantics<arbitrary>], iteration_bounds = array<i64: 1, 1>, scalar_prefetch = 0 : i64, scratch_operands = 0 : i64, tpu.core_type = #tpu.core_type<tc>, window_params = [{transform_indices = @transform_0, window_bounds = array<i64: 8, 256>}, {transform_indices = @transform_1, window_bounds = array<i64: 8, 256>}, {transform_indices = @transform_2, window_bounds = array<i64: 1, 3, 8, 128>}]} {
    %c0_i32 = arith.constant 0 : i32
    %0 = arith.cmpi eq, %arg1, %c0_i32 : i32
    %1 = arith.extui %0 : i1 to i32
    %c0_i32_0 = arith.constant 0 : i32
    %2 = arith.cmpi ne, %1, %c0_i32_0 : i32
    scf.if %2 {
      %cst_28 = arith.constant 0.000000e+00 : f32
      %46 = vector.broadcast %cst_28 : f32 to vector<1x3x8x128xf32>
      %c0_29 = arith.constant 0 : index
      %c0_30 = arith.constant 0 : index
      %c0_31 = arith.constant 0 : index
      %c0_32 = arith.constant 0 : index
      %47 = vector.load %arg4[%c0_29, %c0_30, %c0_31, %c0_32] : memref<1x3x8x128xf32, #tpu.memory_space<vmem>>, vector<1x3x8x128xf32>
      tpu.vector_store %arg4[%c0_29, %c0_30, %c0_31, %c0_32], %46 {strides = array<i32>} : memref<1x3x8x128xf32, #tpu.memory_space<vmem>>, vector<1x3x8x128xf32>,
    } else {
    }
    %cst = arith.constant 0.000000e+00 : f32
    %3 = vector.broadcast %cst : f32 to vector<8x128xf32>
    %c0_i32_1 = arith.constant 0 : i32
    %c128_i32 = arith.constant 128 : i32
    %4 = arith.muli %c0_i32_1, %c128_i32 : i32
    %5 = tpu.assume_multiple %4, 128 : i32
    %c0 = arith.constant 0 : index
    %6 = arith.index_cast %5 : i32 to index
    %7 = vector.load %arg2[%c0, %6] : memref<8x256xf32, #tpu.memory_space<vmem>>, vector<8x128xf32>
    %c0_2 = arith.constant 0 : index
    %8 = arith.index_cast %5 : i32 to index
    %9 = vector.load %arg3[%c0_2, %8] : memref<8x256xf32, #tpu.memory_space<vmem>>, vector<8x128xf32>
    %10 = arith.mulf %7, %9 : vector<8x128xf32>
    %11 = arith.addf %3, %10 : vector<8x128xf32>
    %12 = arith.mulf %7, %7 : vector<8x128xf32>
    %13 = arith.addf %3, %12 : vector<8x128xf32>
    %14 = arith.mulf %9, %9 : vector<8x128xf32>
    %15 = arith.addf %3, %14 : vector<8x128xf32>
    %c1_i32 = arith.constant 1 : i32
    %c128_i32_3 = arith.constant 128 : i32
    %16 = arith.muli %c1_i32, %c128_i32_3 : i32
    %17 = tpu.assume_multiple %16, 128 : i32
    %c0_4 = arith.constant 0 : index
    %18 = arith.index_cast %17 : i32 to index
    %19 = vector.load %arg2[%c0_4, %18] : memref<8x256xf32, #tpu.memory_space<vmem>>, vector<8x128xf32>
    %c0_5 = arith.constant 0 : index
    %20 = arith.index_cast %17 : i32 to index
    %21 = vector.load %arg3[%c0_5, %20] : memref<8x256xf32, #tpu.memory_space<vmem>>, vector<8x128xf32>
    %22 = arith.mulf %19, %21 : vector<8x128xf32>
    %23 = arith.addf %11, %22 : vector<8x128xf32>
    %24 = arith.mulf %19, %19 : vector<8x128xf32>
    %25 = arith.addf %13, %24 : vector<8x128xf32>
    %26 = arith.mulf %21, %21 : vector<8x128xf32>
    %27 = arith.addf %15, %26 : vector<8x128xf32>
    %c2_i32 = arith.constant 2 : i32
    %c0_6 = arith.constant 0 : index
    %c0_7 = arith.constant 0 : index
    %c0_8 = arith.constant 0 : index
    %c0_9 = arith.constant 0 : index
    %28 = vector.load %arg4[%c0_6, %c0_7, %c0_8, %c0_9] : memref<1x3x8x128xf32, #tpu.memory_space<vmem>>, vector<1x1x8x128xf32>
    %29 = vector.shape_cast %28 : vector<1x1x8x128xf32> to vector<8x128xf32>
    %30 = arith.addf %29, %23 : vector<8x128xf32>
    %c0_10 = arith.constant 0 : index
    %c0_11 = arith.constant 0 : index
    %c0_12 = arith.constant 0 : index
    %c0_13 = arith.constant 0 : index
    %31 = vector.load %arg4[%c0_10, %c0_11, %c0_12, %c0_13] : memref<1x3x8x128xf32, #tpu.memory_space<vmem>>, vector<1x1x8x128xf32>
    %32 = vector.shape_cast %31 : vector<1x1x8x128xf32> to vector<8x128xf32>
    %33 = vector.shape_cast %30 : vector<8x128xf32> to vector<1x1x8x128xf32>
    tpu.vector_store %arg4[%c0_10, %c0_11, %c0_12, %c0_13], %33 {strides = array<i32>} : memref<1x3x8x128xf32, #tpu.memory_space<vmem>>, vector<1x1x8x128xf32>,
    %c0_14 = arith.constant 0 : index
    %c1 = arith.constant 1 : index
    %c0_15 = arith.constant 0 : index
    %c0_16 = arith.constant 0 : index
    %34 = vector.load %arg4[%c0_14, %c1, %c0_15, %c0_16] : memref<1x3x8x128xf32, #tpu.memory_space<vmem>>, vector<1x1x8x128xf32>
    %35 = vector.shape_cast %34 : vector<1x1x8x128xf32> to vector<8x128xf32>
    %36 = arith.addf %35, %25 : vector<8x128xf32>
    %c0_17 = arith.constant 0 : index
    %c1_18 = arith.constant 1 : index
    %c0_19 = arith.constant 0 : index
    %c0_20 = arith.constant 0 : index
    %37 = vector.load %arg4[%c0_17, %c1_18, %c0_19, %c0_20] : memref<1x3x8x128xf32, #tpu.memory_space<vmem>>, vector<1x1x8x128xf32>
    %38 = vector.shape_cast %37 : vector<1x1x8x128xf32> to vector<8x128xf32>
    %39 = vector.shape_cast %36 : vector<8x128xf32> to vector<1x1x8x128xf32>
    tpu.vector_store %arg4[%c0_17, %c1_18, %c0_19, %c0_20], %39 {strides = array<i32>} : memref<1x3x8x128xf32, #tpu.memory_space<vmem>>, vector<1x1x8x128xf32>,
    %c0_21 = arith.constant 0 : index
    %c2 = arith.constant 2 : index
    %c0_22 = arith.constant 0 : index
    %c0_23 = arith.constant 0 : index
    %40 = vector.load %arg4[%c0_21, %c2, %c0_22, %c0_23] : memref<1x3x8x128xf32, #tpu.memory_space<vmem>>, vector<1x1x8x128xf32>
    %41 = vector.shape_cast %40 : vector<1x1x8x128xf32> to vector<8x128xf32>
    %42 = arith.addf %41, %27 : vector<8x128xf32>
    %c0_24 = arith.constant 0 : index
    %c2_25 = arith.constant 2 : index
    %c0_26 = arith.constant 0 : index
    %c0_27 = arith.constant 0 : index
    %43 = vector.load %arg4[%c0_24, %c2_25, %c0_26, %c0_27] : memref<1x3x8x128xf32, #tpu.memory_space<vmem>>, vector<1x1x8x128xf32>
    %44 = vector.shape_cast %43 : vector<1x1x8x128xf32> to vector<8x128xf32>
    %45 = vector.shape_cast %42 : vector<8x128xf32> to vector<1x1x8x128xf32>
    tpu.vector_store %arg4[%c0_24, %c2_25, %c0_26, %c0_27], %45 {strides = array<i32>} : memref<1x3x8x128xf32, #tpu.memory_space<vmem>>, vector<1x1x8x128xf32>,
    return
  }
  func.func @transform_0(%arg0: i32, %arg1: i32) -> (i32, i32) {
    %c1_i32 = arith.constant 1 : i32
    %0 = arith.muli %arg0, %c1_i32 : i32
    %1 = arith.addi %0, %arg1 : i32
    %c0_i32 = arith.constant 0 : i32
    %c0_i32_0 = arith.constant 0 : i32
    return %c0_i32, %1 : i32, i32
  }
  func.func @transform_1(%arg0: i32, %arg1: i32) -> (i32, i32) {
    %c1_i32 = arith.constant 1 : i32
    %0 = arith.muli %arg0, %c1_i32 : i32
    %1 = arith.addi %0, %arg1 : i32
    %c0_i32 = arith.constant 0 : i32
    %c0_i32_0 = arith.constant 0 : i32
    return %c0_i32, %1 : i32, i32
  }
  func.func @transform_2(%arg0: i32, %arg1: i32) -> (i32, i32, i32, i32) {
    %c0_i32 = arith.constant 0 : i32
    %c0_i32_0 = arith.constant 0 : i32
    %c0_i32_1 = arith.constant 0 : i32
    %c0_i32_2 = arith.constant 0 : i32
    return %arg0, %c0_i32, %c0_i32_0, %c0_i32_1 : i32, i32, i32, i32
  }
}

</mosaic_0001>

<bundles_post_ra>
// kernel: tpu_custom_call.1
= control target key start
LH: loop header
LB: loop body
LE: loop exit
PB: predicated region body
PF: predicated region fallthrough
CT: control target
= control target key end

     0   :  { %7 = vsyncpa [#allocation3], 0  ;;  %s203_s0 = inlined_call_operand.hbm [shape: f32[8,256], index: 0, kind: input, shape index: {}]   ;;  %s204_s1 = inlined_call_operand.hbm [shape: f32[8,256], index: 1, kind: input, shape index: {}]   ;;  %s205_s2 = inlined_call_operand.hbm [shape: f32[1,3,8,128], index: 2, kind: output, shape index: {}]  }
   0x1   :  { %8 = vsyncpa [#allocation6], 0 }
   0x2   :  { %9 = vsyncpa [#allocation4], 0  ;;  %s174_s9 = smov [#allocation2]   ;;  %s175_s11 = smov [#allocation5]  }
   0x3   :  { %s20_s10 = sshll.u32 %s174_s9, 4  ;;  %s34_s12 = sshll.u32 %s175_s11, 4  ;;  %s21_s10 = int_to_ptr.vmem [resolvable:$true] %s20_s10  ;;  %s35_s12 = int_to_ptr.vmem [resolvable:$true] %s34_s12 }
   0x4   :  { %s116_s13 = scalar_lea.vmem %s21_s10, 256  ;;  %p121_p1 = scmp.lt.s32.totalorder %s21_s10, %s21_s10 }
   0x5   :  { %p117_p0 = scmp.ne.s32.totalorder %s21_s10, %s116_s13  ;;  %p122_p2 = scmp.lt.s32.totalorder %s116_s13, %s116_s13 }
   0x7   :  { %p123_p3 = por %p122_p2, %p121_p1 }
   0x9   :  { %p124_p4 = pnand %p123_p3, %p117_p0 }
   0xb   :  { %127 = shalt.err (!%p124_p4)
}
   0xc   :  { %23 = dma.hbm_to_vmem [thread:$0]  %s203_s0, 256, %s21_s10, [#allocation3]  }
   0xd   :  { %s136_s16 = scalar_lea.vmem %s35_s12, 256  ;;  %p141_p6 = scmp.lt.s32.totalorder %s35_s12, %s35_s12 }
   0xe   :  { %p137_p5 = scmp.ne.s32.totalorder %s35_s12, %s136_s16  ;;  %p142_p7 = scmp.lt.s32.totalorder %s136_s16, %s136_s16 }
  0x10   :  { %p143_p8 = por %p142_p7, %p141_p6 }
  0x12   :  { %p144_p9 = pnand %p143_p8, %p137_p5 }
  0x14   :  { %147 = shalt.err (!%p144_p9)
}
  0x15   :  { %37 = dma.hbm_to_vmem [thread:$0]  %s204_s1, 256, %s35_s12, [#allocation6]  }
  0x16   :  { %168 = dma.done.wait [#allocation3], 256  }
  0x17   :  { %169 = vsyncadd [#allocation3], 4294967040 }
  0x18   :  { %170 = dma.done.wait [#allocation6], 256  }
  0x19   :  { %171 = vsyncadd [#allocation6], 4294967040  ;;  %v55_v0 = vld [vmem:[#allocation2] sm:$0xff]  ;;  %v56_v1 = vld [vmem:[#allocation5] sm:$0xff]  ;;  %s176_s0 = smov [#allocation7]  }
  0x1a   :  { %v64_v2 = vld [vmem:[#allocation2 + $0x8] sm:$0xff]  ;;  %v57_v3 = vmul.f32 %v56_v1, %v55_v0  ;;  %v66_v4 = vld [vmem:[#allocation5 + $0x8] sm:$0xff]  ;;  %v59_v5 = vmul.f32 %v55_v0, %v55_v0  ;;  %v61_v7 = vmul.f32 %v56_v1, %v56_v1  ;;  %s89_s19 = sshll.u32 %s176_s0, 4  ;;  %s90_s19 = int_to_ptr.vmem [resolvable:$true] %s89_s19 }
  0x1b   :  { %v69_v6 = vmul.f32 %v64_v2, %v64_v2  ;;  %v67_v8 = vmul.f32 %v66_v4, %v64_v2  ;;  %v71_v9 = vmul.f32 %v66_v4, %v66_v4  ;;  %s148_s1 = scalar_lea.vmem %s90_s19, 384  ;;  %p153_p11 = scmp.lt.s32.totalorder %s90_s19, %s90_s19 }
  0x1c   :  { %p149_p10 = scmp.ne.s32.totalorder %s90_s19, %s148_s1  ;;  %p154_p12 = scmp.lt.s32.totalorder %s148_s1, %s148_s1 }
  0x1d   :  { %v70_v10 = vadd.f32 %v69_v6, %v59_v5  ;;  %v68_v11 = vadd.f32 %v67_v8, %v57_v3  ;;  %v72_v12 = vadd.f32 %v71_v9, %v61_v7 }
  0x1e   :  { %p155_p13 = por %p154_p12, %p153_p11 }
  0x1f   :  { %79 = vst [vmem:[#allocation7 + $0x8] sm:$0xff] %v70_v10  ;;  %75 = vst [vmem:[#allocation7] sm:$0xff] %v68_v11 }
  0x20   :  { %83 = vst [vmem:[#allocation7 + $0x10] sm:$0xff] %v72_v12  ;;  %p156_p0 = pnand %p155_p13, %p149_p10 }
  0x22   :  { %159 = shalt.err (!%p156_p0)
}
  0x23   :  { %s177_s20 = smov 128   ;;  %s178_s21 = smov 8  }
  0x24   :  { %95 = dma.vmem_to_hbm [thread:$0]  %s90_s19, 384, %s205_s2, [#allocation4], %s177_s20, %s177_s20, %s178_s21  }
  0x25   :  { %172 = dma.done.wait [#allocation4], 384  }
  0x26   :  { %173 = vsyncadd [#allocation4], 4294966912 }
  0x27   :  { %99 = vsyncpa [#allocation3], 1 }
  0x28   :  { %100 = vsyncpa [#allocation6], 1 }
  0x29   :  { %101 = vsyncpa [#allocation4], 1 }

</bundles_post_ra>
